<compile_context>
chip_gen: v6e
topology: v6e:2x2x1
jax: 0.10.0
libtpu: 0.0.40
codegen_flags: <defaults>
</compile_context>

<pallas_src>
from functools import partial

import jax
import jax.numpy as jnp
from jax.experimental import pallas as pl
from jax.experimental.pallas import tpu as pltpu

_LANE_CANDIDATES = (4096, 2048, 1024, 512, 256, 128)
_ROW_ALIGN = 32                          # covers f32 (8), bf16 (16), int8 (32) sublane tiles
_VMEM_BUDGET_BYTES = 12 * 1024 * 1024    # total for all streams x 2 pipeline buffers
_MIN_SPLIT_BYTES = 2 * 1024 * 1024       # split >=2 blocks above this so v7x megacore engages
_VMEM_LIMIT_BYTES = 32 * 1024 * 1024     # headroom on v5e; == scoped default on v6e/v7x


# ---------------------------------------------------------------------------
# Kernels (elementwise hot path)
# ---------------------------------------------------------------------------
def _relu_kernel(x_ref, y_ref):
    # mode 0: y = relu(x)
    y_ref[...] = jnp.maximum(x_ref[...], jnp.zeros((), x_ref.dtype))


def _relu_mask_kernel(x_ref, y_ref, idx_ref):
    # mode 1: y = relu(x); relu_index = 1 where relu(x) > 0 else 0
    x = x_ref[...]
    zero = jnp.zeros((), x.dtype)
    y = jnp.maximum(x, zero)
    y_ref[...] = y
    idx_ref[...] = (y > zero).astype(idx_ref.dtype)


def _mask_mul_kernel(x_ref, idx_ref, y_ref):
    # mode 2: y = x * relu_index
    y_ref[...] = x_ref[...] * idx_ref[...].astype(x_ref.dtype)


# ---------------------------------------------------------------------------
# Layout helpers (plain JAX glue; copy-free in the common case)
# ---------------------------------------------------------------------------
def _pick_lanes(n):
    """Return (lanes, exact).  exact=True when lanes divides n (zero-copy view)."""
    for lanes in _LANE_CANDIDATES:
        if n % lanes == 0:
            return lanes, True
    for lanes in _LANE_CANDIDATES:
        if n >= lanes:
            return lanes, False          # aligned prefix + tiny (< lanes) jnp tail
    return None, False                   # tiny tensor: pure jnp, no kernel


def _block_rows(rows, lanes, stream_bytes_per_elem):
    """Rows per block: big enough to hit roofline, small enough for VMEM,
    split >=2 blocks for medium tensors so both v7x TensorCores engage."""
    bytes_per_row = lanes * stream_bytes_per_elem
    max_rows = (_VMEM_BUDGET_BYTES // (2 * bytes_per_row)) // _ROW_ALIGN * _ROW_ALIGN
    max_rows = max(_ROW_ALIGN, max_rows)
    if rows > max_rows:
        return max_rows
    if rows > _ROW_ALIGN and rows * bytes_per_row > _MIN_SPLIT_BYTES:
        half = ((rows + 1) // 2 + _ROW_ALIGN - 1) // _ROW_ALIGN * _ROW_ALIGN
        return min(max_rows, half)
    return rows


def _elementwise_call(kernel, out_dtypes, slabs, block_rows, aliases=None):
    rows, lanes = slabs[0].shape
    grid = (pl.cdiv(rows, block_rows),)
    in_specs = [pl.BlockSpec((block_rows, lanes), lambda i: (i, 0)) for _ in slabs]
    out_specs = [pl.BlockSpec((block_rows, lanes), lambda i: (i, 0)) for _ in out_dtypes]
    out_shapes = tuple(jax.ShapeDtypeStruct((rows, lanes), dt) for dt in out_dtypes)
    single = len(out_dtypes) == 1

    in_bytes = sum(int(s.size) * s.dtype.itemsize for s in slabs)
    out_bytes = sum(rows * lanes * jnp.dtype(dt).itemsize for dt in out_dtypes)
    cost = pl.CostEstimate(flops=rows * lanes, transcendentals=0,
                           bytes_accessed=in_bytes + out_bytes)

    kwargs = {}
    if aliases:
        kwargs["input_output_aliases"] = dict(aliases)

    return pl.pallas_call(
        kernel,
        grid=grid,
        in_specs=in_specs,
        out_specs=out_specs[0] if single else tuple(out_specs),
        out_shape=out_shapes[0] if single else out_shapes,
        compiler_params=pltpu.CompilerParams(
            dimension_semantics=("parallel",),
            vmem_limit_bytes=_VMEM_LIMIT_BYTES),
        cost_estimate=cost,
        **kwargs,
    )(*slabs)


# ---------------------------------------------------------------------------
# Mode entry points
# ---------------------------------------------------------------------------
@partial(jax.jit, static_argnames=("inplace",))
def relu_mode0(x, inplace=False):
    n = x.size
    lanes, exact = _pick_lanes(n)
    if lanes is None:                              # tiny tensor: no kernel needed
        return jnp.maximum(x, jnp.zeros((), x.dtype))
    flat = x.reshape(-1)
    main_n = n if exact else (n // lanes) * lanes
    slab = (flat if exact else flat[:main_n]).reshape(-1, lanes)
    br = _block_rows(slab.shape[0], lanes, 2 * x.dtype.itemsize)
    y = _elementwise_call(_relu_kernel, (x.dtype,), (slab,), br,
                          aliases={0: 0} if inplace else None)
    y_flat = y.reshape(-1)
    if not exact:
        tail = jnp.maximum(flat[main_n:], jnp.zeros((), x.dtype))
        y_flat = jnp.concatenate([y_flat, tail])
    return y_flat.reshape(x.shape)


@partial(jax.jit, static_argnames=("index_dtype",))
def relu_mode1(x, index_dtype=jnp.int8):
    idx_dt = jnp.dtype(index_dtype)
    n = x.size
    lanes, exact = _pick_lanes(n)
    if lanes is None:
        y = jnp.maximum(x, jnp.zeros((), x.dtype))
        return y, (y > 0).astype(idx_dt)
    flat = x.reshape(-1)
    main_n = n if exact else (n // lanes) * lanes
    slab = (flat if exact else flat[:main_n]).reshape(-1, lanes)
    br = _block_rows(slab.shape[0], lanes, 2 * x.dtype.itemsize + idx_dt.itemsize)
    y, idx = _elementwise_call(_relu_mask_kernel, (x.dtype, idx_dt), (slab,), br)
    y_flat, idx_flat = y.reshape(-1), idx.reshape(-1)
    if not exact:
        ty = jnp.maximum(flat[main_n:], jnp.zeros((), x.dtype))
        ti = (ty > 0).astype(idx_dt)
        y_flat = jnp.concatenate([y_flat, ty])
        idx_flat = jnp.concatenate([idx_flat, ti])
    return y_flat.reshape(x.shape), idx_flat.reshape(x.shape)


@partial(jax.jit, static_argnames=("inplace",))
def relu_mode2(x, relu_index, inplace=False):
    n = x.size
    lanes, exact = _pick_lanes(n)
    if lanes is None:
        return x * relu_index.reshape(x.shape).astype(x.dtype)
    flat_x = x.reshape(-1)
    flat_m = relu_index.reshape(-1)
    main_n = n if exact else (n // lanes) * lanes
    xs = (flat_x if exact else flat_x[:main_n]).reshape(-1, lanes)
    ms = (flat_m if exact else flat_m[:main_n]).reshape(-1, lanes)
    br = _block_rows(xs.shape[0], lanes,
                     2 * x.dtype.itemsize + relu_index.dtype.itemsize)
    y = _elementwise_call(_mask_mul_kernel, (x.dtype,), (xs, ms), br,
                          aliases={0: 0} if inplace else None)
    y_flat = y.reshape(-1)
    if not exact:
        ty = flat_x[main_n:] * flat_m[main_n:].astype(x.dtype)
        y_flat = jnp.concatenate([y_flat, ty])
    return y_flat.reshape(x.shape)


# ---------------------------------------------------------------------------
# Module wrapper mirroring my_ReLU semantics
# ---------------------------------------------------------------------------
class MyReLU:
    def __init__(self, inplace=False, index_dtype=jnp.int8):
        self.inplace = inplace           # honored via input_output_aliases (modes 0/2)
        self.index_dtype = index_dtype   # int8 by default (values 0/1); pass a float
        #                                 dtype for exact PyTorch dtype parity
        self._mode = 0
        self._value = None
        self.relu_index = None

    def setMode(self, m):
        self._mode = m

    def __call__(self, x):
        if self._mode == 1:
            y, idx = relu_mode1(x, index_dtype=self.index_dtype)
            self.relu_index = idx
            return y
        elif self._mode == 2:
            if self.relu_index is None:
                raise ValueError("relu_index is None")
            if x.size != self.relu_index.size:
                raise ValueError("input / relu_index element-count mismatch")
            y = relu_mode2(x, self.relu_index, inplace=self.inplace)
            self._value = y
            return y
        else:
            return relu_mode0(x, inplace=self.inplace)

    def getIndex(self, pos):
        return float(self.relu_index.reshape(-1)[pos])

    def getOutShape(self):
        return self._value.shape

    # TODO(synk): `backward` in the PyTorch module is host-side bookkeeping
    # (torch.cat of scalar rows + prints); no Pallas equivalent — not implemented.


if __name__ == "__main__":
    key = jax.random.PRNGKey(0)
    k0, k1, k2 = jax.random.split(key, 3)

    # Small NCHW input consistent with the module's usage.
    x = jax.random.normal(k0, (2, 4, 16, 16), dtype=jnp.float32)
    m = MyReLU()

    # mode 0: plain ReLU
    y0 = m(x)
    jax.block_until_ready(y0)
    assert jnp.allclose(y0, jnp.maximum(x, 0.0))

    # mode 1: ReLU + stored binary index (compact int8 mask by default)
    m.setMode(1)
    y1 = m(x)
    jax.block_until_ready(y1)
    ref_idx = jnp.where(x > 0, 1.0, 0.0)
    assert jnp.allclose(y1, jnp.maximum(x, 0.0))
    assert m.relu_index.dtype == jnp.int8
    assert jnp.allclose(m.relu_index.astype(jnp.float32), ref_idx)

    # mode 2: multiply a fresh input by the stored index
    x2 = jax.random.normal(k1, (2, 4, 16, 16), dtype=jnp.float32)
    m.setMode(2)
    y2 = m(x2)
    jax.block_until_ready(y2)
    assert jnp.allclose(y2, x2 * ref_idx)
    assert m.getOutShape() == x2.shape
    assert m.getIndex(0) in (0.0, 1.0)

    # Larger shape exercising multi-block tiling / the >=2-block split path.
    xl = jax.random.normal(k2, (8, 64, 32, 32), dtype=jnp.float32)
    ml = MyReLU()
    ml.setMode(1)
    yl = ml(xl)
    jax.block_until_ready(yl)
    ref_idx_l = jnp.where(xl > 0, 1.0, 0.0)
    assert jnp.allclose(yl, jnp.maximum(xl, 0.0))
    assert jnp.allclose(ml.relu_index.astype(jnp.float32), ref_idx_l)
    ml.setMode(2)
    yl2 = ml(xl)
    jax.block_until_ready(yl2)
    assert jnp.allclose(yl2, xl * ref_idx_l)

    # Odd element count: aligned-prefix kernel + jnp tail (no pad/slice passes).
    xo = jax.random.normal(k2, (3, 5, 7, 11), dtype=jnp.float32)
    mo = MyReLU()
    yo = mo(xo)
    jax.block_until_ready(yo)
    assert jnp.allclose(yo, jnp.maximum(xo, 0.0))
    mo.setMode(1)
    yo1 = mo(xo)
    jax.block_until_ready(yo1)
    assert jnp.allclose(mo.relu_index.astype(jnp.float32), jnp.where(xo > 0, 1.0, 0.0))
    mo.setMode(2)
    yo2 = mo(xo)
    jax.block_until_ready(yo2)
    assert jnp.allclose(yo2, xo * jnp.where(xo > 0, 1.0, 0.0))

    # inplace=True path (input_output_aliases on modes 0/2).
    mip = MyReLU(inplace=True)
    yip = mip(x)
    jax.block_until_ready(yip)
    assert jnp.allclose(yip, jnp.maximum(x, 0.0))
    mip.setMode(1)
    _ = mip(x)
    mip.setMode(2)
    yip2 = mip(x2)
    jax.block_until_ready(yip2)
    assert jnp.allclose(yip2, x2 * ref_idx)

    # Float-mask variant for exact PyTorch dtype parity.
    mf = MyReLU(index_dtype=jnp.float32)
    mf.setMode(1)
    yf = mf(x)
    jax.block_until_ready(yf)
    assert mf.relu_index.dtype == jnp.float32
    assert jnp.allclose(mf.relu_index, ref_idx)
    mf.setMode(2)
    yf2 = mf(x2)
    jax.block_until_ready(yf2)
    assert jnp.allclose(yf2, x2 * ref_idx)

    print("KERNEL_OK")
</pallas_src>

<mosaic_0001>
module attributes {stable_mosaic.version = 11 : i64} {
  func.func @_relu_kernel(%arg0: i32, %arg1: memref<1x2048xf32, #tpu.memory_space<vmem>>, %arg2: memref<1x2048xf32, #tpu.memory_space<vmem>>) attributes {dimension_semantics = [#tpu.dimension_semantics<parallel>], iteration_bounds = array<i64: 1>, scalar_prefetch = 0 : i64, scratch_operands = 0 : i64, tpu.core_type = #tpu.core_type<tc>, window_params = [{transform_indices = @transform_0, window_bounds = array<i64: 1, 2048>}, {transform_indices = @transform_1, window_bounds = array<i64: 1, 2048>}]} {
    %c0 = arith.constant 0 : index
    %c0_0 = arith.constant 0 : index
    %0 = vector.load %arg1[%c0, %c0_0] : memref<1x2048xf32, #tpu.memory_space<vmem>>, vector<1x2048xf32>
    %cst = arith.constant 0.000000e+00 : f32
    %1 = vector.broadcast %cst : f32 to vector<1x2048xf32>
    %2 = arith.maximumf %0, %1 : vector<1x2048xf32>
    %c0_1 = arith.constant 0 : index
    %c0_2 = arith.constant 0 : index
    %3 = vector.load %arg2[%c0_1, %c0_2] : memref<1x2048xf32, #tpu.memory_space<vmem>>, vector<1x2048xf32>
    tpu.vector_store %arg2[%c0_1, %c0_2], %2 {strides = array<i32>} : memref<1x2048xf32, #tpu.memory_space<vmem>>, vector<1x2048xf32>,
    return
  }
  func.func @transform_0(%arg0: i32) -> (i32, i32) {
    %c0_i32 = arith.constant 0 : i32
    %c0_i32_0 = arith.constant 0 : i32
    return %arg0, %c0_i32 : i32, i32
  }
  func.func @transform_1(%arg0: i32) -> (i32, i32) {
    %c0_i32 = arith.constant 0 : i32
    %c0_i32_0 = arith.constant 0 : i32
    return %arg0, %c0_i32 : i32, i32
  }
}

</mosaic_0001>

<bundles_post_ra>
// kernel: relu_mode0.1
= control target key start
LH: loop header
LB: loop body
LE: loop exit
PB: predicated region body
PF: predicated region fallthrough
CT: control target
= control target key end

     0   :  { %s40_s0 = inlined_call_operand.vmem [shape: f32[1,2048], index: 0, kind: input, shape index: {}]   ;;  %s41_s1 = inlined_call_operand.vmem [shape: f32[1,2048], index: 1, kind: output, shape index: {}]  }
   0x1   :  { %v8_v0 = vld [vmem:[%s40_s0] sm:$0xff]  ;;  %v9_v1 = vld [vmem:[%s40_s0 + $0x8] sm:$0xff] }
   0x2   :  { %v10_v2 = vmax.f32 %v8_v0, 0.0  ;;  %v11_v3 = vmax.f32 %v9_v1, 0.0 }
   0x4   :  { %12 = vst [vmem:[%s41_s1] sm:$0xff] %v10_v2  ;;  %13 = vst [vmem:[%s41_s1 + $0x8] sm:$0xff] %v11_v3 }

</bundles_post_ra>
